<compile_context>
chip_gen: v5e
topology: v5e:2x2
jax: 0.10.0
libtpu: 0.0.40
codegen_flags: <defaults>
</compile_context>

<pallas_src>
import jax
import jax.numpy as jnp
from jax import lax
from jax.experimental import pallas as pl
from jax.experimental.pallas import tpu as pltpu


def basic_block_forward(x, params, *, kernel_size, stride, groups,
                        downsample, use_bn, use_do, is_first_block,
                        eps=1e-5):
    """Pallas BasicBlock.forward. x: (N, C_in, L) float32 in NCL layout."""
    N, C_in, L = x.shape
    K = int(kernel_size)
    w1 = params["conv1_w"]          # (C_out, C_in//groups, K)   (PyTorch layout)
    b1 = params["conv1_b"]          # (C_out,)
    w2 = params["conv2_w"]          # (C_out, C_out//groups, K)
    b2 = params["conv2_b"]          # (C_out,)
    C_out = w1.shape[0]
    assert C_in % groups == 0 and C_out % groups == 0
    cig = C_in // groups
    cog = C_out // groups

    s1 = int(stride) if downsample else 1          # conv1 stride == block stride

    # ---- static SAME-padding geometry (identical math to the PyTorch module) ----
    out_dim1 = (L + s1 - 1) // s1
    p1 = max(0, (out_dim1 - 1) * s1 + K - L)
    pad_l1 = p1 // 2
    Lp1 = L + p1
    L1 = (Lp1 - K) // s1 + 1                       # conv1 / block output length

    p2 = max(0, (L1 - 1) + K - L1)                 # conv2 (stride 1) -> K - 1
    pad_l2 = p2 // 2
    Lp2 = L1 + p2

    pp = max(0, s1 - 1)                            # identity max-pool pad (window=s1)
    pad_lp = pp // 2
    Lpp = L + pp

    J = (L1 - 1) * s1 + 1                          # stride-1 span before selection

    # ---- fold BatchNorm (eval mode, running stats) into per-channel scale/shift ----
    if use_bn:
        sc1 = params["bn1_gamma"] / jnp.sqrt(params["bn1_var"] + eps)
        sh1 = params["bn1_beta"] - params["bn1_mean"] * sc1
        sc2 = params["bn2_gamma"] / jnp.sqrt(params["bn2_var"] + eps)
        sh2 = params["bn2_beta"] - params["bn2_mean"] * sc2
    else:
        sc1 = jnp.ones((C_in,), jnp.float32)
        sh1 = jnp.zeros((C_in,), jnp.float32)
        sc2 = jnp.ones((C_out,), jnp.float32)
        sh2 = jnp.zeros((C_out,), jnp.float32)
    sc1 = sc1.reshape(C_in, 1).astype(jnp.float32)
    sh1 = sh1.reshape(C_in, 1).astype(jnp.float32)
    sc2 = sc2.reshape(C_out, 1).astype(jnp.float32)
    sh2 = sh2.reshape(C_out, 1).astype(jnp.float32)

    # weights as (K, C_out, C_in_per_group): one (C_out, C_in_g) matrix per tap
    w1_k = jnp.transpose(w1, (2, 0, 1)).astype(jnp.float32)
    w2_k = jnp.transpose(w2, (2, 0, 1)).astype(jnp.float32)
    b1c = b1.reshape(C_out, 1).astype(jnp.float32)
    b2c = b2.reshape(C_out, 1).astype(jnp.float32)

    def kernel(x_ref, w1_ref, b1_ref, w2_ref, b2_ref,
               sc1_ref, sh1_ref, sc2_ref, sh2_ref,
               o_ref, xp1_ref, xp2_ref, xpp_ref):
        x_nc = x_ref[0].astype(jnp.float32)                     # (C_in, L)

        # ---- bn1 / relu1 ----
        h = x_nc
        if not is_first_block:
            if use_bn:
                h = h * sc1_ref[...] + sh1_ref[...]
            h = jnp.maximum(h, 0.0)
        # TODO(synk): Dropout(p=0.5) is inference-mode identity here; training-mode
        # dropout would require pltpu.prng_seed / prng_random_bits.

        # One-hot "take every s1-th column" matrix, shared by the conv1 stride and
        # the identity max-pool (keeps every access lane-contiguous, MXU-only).
        if s1 > 1:
            rows = lax.broadcasted_iota(jnp.int32, (J, L1), 0)
            cols = lax.broadcasted_iota(jnp.int32, (J, L1), 1)
            sel = jnp.where(rows == cols * s1, 1.0, 0.0).astype(jnp.float32)

        def grouped_conv(w_ref, src_ref, cin_total, span):
            # sum_k W_k @ src[:, k:k+span]  with channel groups.
            cin_g = cin_total // groups
            w = w_ref[...]                                      # (K, C_out, cin_g)
            pieces = []
            for g in range(groups):
                acc = jnp.zeros((cog, span), jnp.float32)
                ci0 = g * cin_g
                co0 = g * cog
                for k in range(K):
                    wk = w[k, co0:co0 + cog, :]                 # (cog, cin_g)
                    xs = src_ref[ci0:ci0 + cin_g, k:k + span]   # (cin_g, span)
                    acc = acc + jnp.dot(wk, xs,
                                        preferred_element_type=jnp.float32)
                pieces.append(acc)
            return pieces[0] if groups == 1 else jnp.concatenate(pieces, axis=0)

        # ---- conv1: SAME pad in VMEM scratch, tap-wise MXU matmuls ----
        xp1_ref[...] = jnp.zeros_like(xp1_ref)
        xp1_ref[:, pad_l1:pad_l1 + L] = h
        acc1 = grouped_conv(w1_ref, xp1_ref, C_in, J)           # (C_out, J)
        if s1 > 1:
            y1 = jnp.dot(acc1, sel, preferred_element_type=jnp.float32)
        else:
            y1 = acc1                                           # J == L1 when s1==1
        y1 = y1 + b1_ref[...]                                   # (C_out, L1)

        # ---- bn2 / relu2 / conv2 (stride 1) ----
        h2 = y1
        if use_bn:
            h2 = h2 * sc2_ref[...] + sh2_ref[...]
        h2 = jnp.maximum(h2, 0.0)
        xp2_ref[...] = jnp.zeros_like(xp2_ref)
        xp2_ref[:, pad_l2:pad_l2 + L1] = h2
        y2 = grouped_conv(w2_ref, xp2_ref, C_out, L1) + b2_ref[...]   # (C_out, L1)

        # ---- identity branch: SAME max-pool (window = stride) + channel zero-pad ----
        if downsample and s1 > 1:
            xpp_ref[...] = jnp.zeros_like(xpp_ref)              # constant-0 pad, as in F.pad
            xpp_ref[:, pad_lp:pad_lp + L] = x_nc
            ident = None
            for k in range(s1):
                cand = jnp.dot(xpp_ref[:, k:k + J], sel,
                               preferred_element_type=jnp.float32)    # (C_in, L1)
                ident = cand if ident is None else jnp.maximum(ident, cand)
        else:
            ident = x_nc                                        # here L1 == L
        if C_out != C_in:
            ch1 = (C_out - C_in) // 2
            ch2 = C_out - C_in - ch1
            ident = jnp.concatenate(
                [jnp.zeros((ch1, L1), jnp.float32), ident,
                 jnp.zeros((ch2, L1), jnp.float32)], axis=0)

        o_ref[0] = (y2 + ident).astype(o_ref.dtype)

    out = pl.pallas_call(
        kernel,
        out_shape=jax.ShapeDtypeStruct((N, C_out, L1), x.dtype),
        grid=(N,),
        in_specs=[
            pl.BlockSpec((1, C_in, L), lambda n: (n, 0, 0)),
            pl.BlockSpec((K, C_out, cig), lambda n: (0, 0, 0)),
            pl.BlockSpec((C_out, 1), lambda n: (0, 0)),
            pl.BlockSpec((K, C_out, cog), lambda n: (0, 0, 0)),
            pl.BlockSpec((C_out, 1), lambda n: (0, 0)),
            pl.BlockSpec((C_in, 1), lambda n: (0, 0)),
            pl.BlockSpec((C_in, 1), lambda n: (0, 0)),
            pl.BlockSpec((C_out, 1), lambda n: (0, 0)),
            pl.BlockSpec((C_out, 1), lambda n: (0, 0)),
        ],
        out_specs=pl.BlockSpec((1, C_out, L1), lambda n: (n, 0, 0)),
        scratch_shapes=[
            pltpu.VMEM((C_in, Lp1), jnp.float32),   # padded conv1 input
            pltpu.VMEM((C_out, Lp2), jnp.float32),  # padded conv2 input
            pltpu.VMEM((C_in, Lpp), jnp.float32),   # padded identity (max-pool)
        ],
        compiler_params=pltpu.CompilerParams(
            dimension_semantics=("parallel",),
            vmem_limit_bytes=32 * 1024 * 1024,      # explicit; safe on v5e/v6e/v7x
        ),
    )(x, w1_k, b1c, w2_k, b2c, sc1, sh1, sc2, sh2)
    return out


def basic_block_reference(x, params, *, kernel_size, stride, groups,
                          downsample, use_bn, use_do, is_first_block, eps=1e-5):
    """Pure-JAX reference mirroring the PyTorch module (inference mode)."""
    K = int(kernel_size)
    N, C_in, L = x.shape
    C_out = params["conv1_w"].shape[0]
    s1 = int(stride) if downsample else 1

    def bn(h, pre):
        sc = params[pre + "_gamma"] / jnp.sqrt(params[pre + "_var"] + eps)
        sh = params[pre + "_beta"] - params[pre + "_mean"] * sc
        return h * sc[None, :, None] + sh[None, :, None]

    def conv_same(h, w, b, s):
        Lh = h.shape[-1]
        od = (Lh + s - 1) // s
        p = max(0, (od - 1) * s + K - Lh)
        hp = jnp.pad(h, ((0, 0), (0, 0), (p // 2, p - p // 2)))
        y = lax.conv_general_dilated(
            hp, w, window_strides=(s,), padding="VALID",
            dimension_numbers=("NCH", "OIH", "NCH"),
            feature_group_count=groups,
            precision=lax.Precision.HIGHEST)
        return y + b[None, :, None]

    out = x
    if not is_first_block:
        if use_bn:
            out = bn(out, "bn1")
        out = jax.nn.relu(out)
    out = conv_same(out, params["conv1_w"], params["conv1_b"], s1)
    if use_bn:
        out = bn(out, "bn2")
    out = jax.nn.relu(out)
    out = conv_same(out, params["conv2_w"], params["conv2_b"], 1)

    identity = x
    if downsample:
        p = max(0, s1 - 1)
        ip = jnp.pad(identity, ((0, 0), (0, 0), (p // 2, p - p // 2)))
        Lp = ip.shape[-1]
        L1 = (Lp - s1) // s1 + 1
        identity = ip[:, :, :L1 * s1].reshape(N, C_in, L1, s1).max(axis=-1)
    if C_out != C_in:
        ch1 = (C_out - C_in) // 2
        ch2 = C_out - C_in - ch1
        identity = jnp.pad(identity, ((0, 0), (ch1, ch2), (0, 0)))
    return out + identity


def _make_params(key, c_in, c_out, k, groups):
    ks = jax.random.split(key, 12)
    return {
        "conv1_w": 0.3 * jax.random.normal(ks[0], (c_out, c_in // groups, k), jnp.float32),
        "conv1_b": 0.1 * jax.random.normal(ks[1], (c_out,), jnp.float32),
        "conv2_w": 0.3 * jax.random.normal(ks[2], (c_out, c_out // groups, k), jnp.float32),
        "conv2_b": 0.1 * jax.random.normal(ks[3], (c_out,), jnp.float32),
        "bn1_gamma": 1.0 + 0.1 * jax.random.normal(ks[4], (c_in,), jnp.float32),
        "bn1_beta": 0.1 * jax.random.normal(ks[5], (c_in,), jnp.float32),
        "bn1_mean": 0.1 * jax.random.normal(ks[6], (c_in,), jnp.float32),
        "bn1_var": 0.5 + jnp.abs(jax.random.normal(ks[7], (c_in,), jnp.float32)),
        "bn2_gamma": 1.0 + 0.1 * jax.random.normal(ks[8], (c_out,), jnp.float32),
        "bn2_beta": 0.1 * jax.random.normal(ks[9], (c_out,), jnp.float32),
        "bn2_mean": 0.1 * jax.random.normal(ks[10], (c_out,), jnp.float32),
        "bn2_var": 0.5 + jnp.abs(jax.random.normal(ks[11], (c_out,), jnp.float32)),
    }


if __name__ == "__main__":
    root = jax.random.PRNGKey(0)
    k_p1, k_p2, k_x1, k_x2 = jax.random.split(root, 4)

    # Config A: downsampling block, channel expansion, BN on (exercises all paths)
    N, C_in, C_out, L, K = 2, 4, 8, 16, 3
    params_a = _make_params(k_p1, C_in, C_out, K, groups=1)
    x_a = jax.random.normal(k_x1, (N, C_in, L), jnp.float32)
    cfg_a = dict(kernel_size=K, stride=2, groups=1, downsample=True,
                 use_bn=True, use_do=True, is_first_block=False)
    y_a = jax.block_until_ready(basic_block_forward(x_a, params_a, **cfg_a))
    y_a_ref = basic_block_reference(x_a, params_a, **cfg_a)
    assert y_a.shape == y_a_ref.shape, (y_a.shape, y_a_ref.shape)
    assert jnp.allclose(y_a, y_a_ref, atol=5e-4, rtol=5e-4), "config A mismatch"

    # Config B: first block, no downsample, no BN, equal channels
    params_b = _make_params(k_p2, C_in, C_in, K, groups=1)
    x_b = jax.random.normal(k_x2, (N, C_in, L), jnp.float32)
    cfg_b = dict(kernel_size=K, stride=2, groups=1, downsample=False,
                 use_bn=False, use_do=True, is_first_block=True)
    y_b = jax.block_until_ready(basic_block_forward(x_b, params_b, **cfg_b))
    y_b_ref = basic_block_reference(x_b, params_b, **cfg_b)
    assert y_b.shape == y_b_ref.shape, (y_b.shape, y_b_ref.shape)
    assert jnp.allclose(y_b, y_b_ref, atol=5e-4, rtol=5e-4), "config B mismatch"

    print("KERNEL_OK")
</pallas_src>

<mosaic_0001>
module attributes {stable_mosaic.version = 11 : i64} {
  func.func @kernel(%arg0: i32, %arg1: memref<1x4x16xf32, #tpu.memory_space<vmem>>, %arg2: memref<3x8x4xf32, #tpu.memory_space<vmem>>, %arg3: memref<8x1xf32, #tpu.memory_space<vmem>>, %arg4: memref<3x8x8xf32, #tpu.memory_space<vmem>>, %arg5: memref<8x1xf32, #tpu.memory_space<vmem>>, %arg6: memref<4x1xf32, #tpu.memory_space<vmem>>, %arg7: memref<4x1xf32, #tpu.memory_space<vmem>>, %arg8: memref<8x1xf32, #tpu.memory_space<vmem>>, %arg9: memref<8x1xf32, #tpu.memory_space<vmem>>, %arg10: memref<1x8x8xf32, #tpu.memory_space<vmem>>, %arg11: memref<4x17xf32, #tpu.memory_space<vmem>>, %arg12: memref<8x10xf32, #tpu.memory_space<vmem>>, %arg13: memref<4x17xf32, #tpu.memory_space<vmem>>) attributes {dimension_semantics = [#tpu.dimension_semantics<parallel>], iteration_bounds = array<i64: 2>, scalar_prefetch = 0 : i64, scratch_operands = 3 : i64, tpu.core_type = #tpu.core_type<tc>, window_params = [{transform_indices = @transform_0, window_bounds = array<i64: 1, 4, 16>}, {pipeline_mode = #tpu.pipeline_mode<synchronous>, transform_indices = @transform_1, window_bounds = array<i64: 3, 8, 4>}, {pipeline_mode = #tpu.pipeline_mode<synchronous>, transform_indices = @transform_2, window_bounds = array<i64: 8, 1>}, {pipeline_mode = #tpu.pipeline_mode<synchronous>, transform_indices = @transform_3, window_bounds = array<i64: 3, 8, 8>}, {pipeline_mode = #tpu.pipeline_mode<synchronous>, transform_indices = @transform_4, window_bounds = array<i64: 8, 1>}, {pipeline_mode = #tpu.pipeline_mode<synchronous>, transform_indices = @transform_5, window_bounds = array<i64: 4, 1>}, {pipeline_mode = #tpu.pipeline_mode<synchronous>, transform_indices = @transform_6, window_bounds = array<i64: 4, 1>}, {pipeline_mode = #tpu.pipeline_mode<synchronous>, transform_indices = @transform_7, window_bounds = array<i64: 8, 1>}, {pipeline_mode = #tpu.pipeline_mode<synchronous>, transform_indices = @transform_8, window_bounds = array<i64: 8, 1>}, {transform_indices = @transform_9, window_bounds = array<i64: 1, 8, 8>}]} {
    %c0 = arith.constant 0 : index
    %c0_0 = arith.constant 0 : index
    %c0_1 = arith.constant 0 : index
    %0 = vector.load %arg1[%c0, %c0_0, %c0_1] : memref<1x4x16xf32, #tpu.memory_space<vmem>>, vector<1x4x16xf32>
    %1 = vector.shape_cast %0 : vector<1x4x16xf32> to vector<4x16xf32>
    %c0_2 = arith.constant 0 : index
    %c0_3 = arith.constant 0 : index
    %2 = vector.load %arg6[%c0_2, %c0_3] : memref<4x1xf32, #tpu.memory_space<vmem>>, vector<4x1xf32>
    %3 = vector.broadcast %2 : vector<4x1xf32> to vector<4x16xf32>
    %4 = arith.mulf %1, %3 : vector<4x16xf32>
    %c0_4 = arith.constant 0 : index
    %c0_5 = arith.constant 0 : index
    %5 = vector.load %arg7[%c0_4, %c0_5] : memref<4x1xf32, #tpu.memory_space<vmem>>, vector<4x1xf32>
    %6 = vector.broadcast %5 : vector<4x1xf32> to vector<4x16xf32>
    %7 = arith.addf %4, %6 : vector<4x16xf32>
    %cst = arith.constant 0.000000e+00 : f32
    %8 = vector.broadcast %cst : f32 to vector<4x16xf32>
    %9 = arith.maximumf %7, %8 : vector<4x16xf32>
    %10 = tpu.iota {dimensions = array<i32: 0>} : vector<15x8xi32>
    %11 = tpu.iota {dimensions = array<i32: 1>} : vector<15x8xi32>
    %c2_i32 = arith.constant 2 : i32
    %12 = vector.broadcast %c2_i32 : i32 to vector<15x8xi32>
    %13 = arith.muli %11, %12 : vector<15x8xi32>
    %14 = arith.cmpi eq, %10, %13 : vector<15x8xi32>
    %cst_6 = arith.constant 1.000000e+00 : f32
    %cst_7 = arith.constant 0.000000e+00 : f32
    %15 = vector.broadcast %cst_6 : f32 to vector<15x8xf32>
    %16 = vector.broadcast %cst_7 : f32 to vector<15x8xf32>
    %17 = arith.select %14, %15, %16 : vector<15x8xi1>, vector<15x8xf32>
    %cst_8 = arith.constant 0.000000e+00 : f32
    %18 = vector.broadcast %cst_8 : f32 to vector<4x17xf32>
    %c0_9 = arith.constant 0 : index
    %c0_10 = arith.constant 0 : index
    %19 = vector.load %arg11[%c0_9, %c0_10] : memref<4x17xf32, #tpu.memory_space<vmem>>, vector<4x17xf32>
    tpu.vector_store %arg11[%c0_9, %c0_10], %18 {strides = array<i32>} : memref<4x17xf32, #tpu.memory_space<vmem>>, vector<4x17xf32>,
    %c0_11 = arith.constant 0 : index
    %c0_12 = arith.constant 0 : index
    %20 = vector.load %arg11[%c0_11, %c0_12] : memref<4x17xf32, #tpu.memory_space<vmem>>, vector<4x16xf32>
    tpu.vector_store %arg11[%c0_11, %c0_12], %9 {strides = array<i32>} : memref<4x17xf32, #tpu.memory_space<vmem>>, vector<4x16xf32>,
    %c0_13 = arith.constant 0 : index
    %c0_14 = arith.constant 0 : index
    %c0_15 = arith.constant 0 : index
    %21 = vector.load %arg2[%c0_13, %c0_14, %c0_15] : memref<3x8x4xf32, #tpu.memory_space<vmem>>, vector<3x8x4xf32>
    %cst_16 = arith.constant 0.000000e+00 : f32
    %22 = vector.broadcast %cst_16 : f32 to vector<8x15xf32>
    %23 = vector.extract_strided_slice %21 {offsets = [0, 0, 0], sizes = [1, 8, 4], strides = [1, 1, 1]} : vector<3x8x4xf32> to vector<1x8x4xf32>
    %24 = vector.shape_cast %23 : vector<1x8x4xf32> to vector<8x4xf32>
    %c0_17 = arith.constant 0 : index
    %c0_18 = arith.constant 0 : index
    %25 = vector.load %arg11[%c0_17, %c0_18] : memref<4x17xf32, #tpu.memory_space<vmem>>, vector<4x15xf32>
    %cst_19 = arith.constant dense<0.000000e+00> : vector<8x15xf32>
    %26 = tpu.matmul %24, %25, %cst_19 {dimension_numbers = #tpu.dot_dimension_numbers<[1], [0], [0], [1], [0, 0, 1, 1], [], []>} : vector<8x4xf32>, vector<4x15xf32>, vector<8x15xf32> -> vector<8x15xf32>
    %27 = arith.addf %22, %26 : vector<8x15xf32>
    %28 = vector.extract_strided_slice %21 {offsets = [1, 0, 0], sizes = [1, 8, 4], strides = [1, 1, 1]} : vector<3x8x4xf32> to vector<1x8x4xf32>
    %29 = vector.shape_cast %28 : vector<1x8x4xf32> to vector<8x4xf32>
    %c0_20 = arith.constant 0 : index
    %c1 = arith.constant 1 : index
    %30 = vector.load %arg11[%c0_20, %c1] : memref<4x17xf32, #tpu.memory_space<vmem>>, vector<4x15xf32>
    %cst_21 = arith.constant dense<0.000000e+00> : vector<8x15xf32>
    %31 = tpu.matmul %29, %30, %cst_21 {dimension_numbers = #tpu.dot_dimension_numbers<[1], [0], [0], [1], [0, 0, 1, 1], [], []>} : vector<8x4xf32>, vector<4x15xf32>, vector<8x15xf32> -> vector<8x15xf32>
    %32 = arith.addf %27, %31 : vector<8x15xf32>
    %33 = vector.extract_strided_slice %21 {offsets = [2, 0, 0], sizes = [1, 8, 4], strides = [1, 1, 1]} : vector<3x8x4xf32> to vector<1x8x4xf32>
    %34 = vector.shape_cast %33 : vector<1x8x4xf32> to vector<8x4xf32>
    %c0_22 = arith.constant 0 : index
    %c2 = arith.constant 2 : index
    %35 = vector.load %arg11[%c0_22, %c2] : memref<4x17xf32, #tpu.memory_space<vmem>>, vector<4x15xf32>
    %cst_23 = arith.constant dense<0.000000e+00> : vector<8x15xf32>
    %36 = tpu.matmul %34, %35, %cst_23 {dimension_numbers = #tpu.dot_dimension_numbers<[1], [0], [0], [1], [0, 0, 1, 1], [], []>} : vector<8x4xf32>, vector<4x15xf32>, vector<8x15xf32> -> vector<8x15xf32>
    %37 = arith.addf %32, %36 : vector<8x15xf32>
    %cst_24 = arith.constant dense<0.000000e+00> : vector<8x8xf32>
    %38 = tpu.matmul %37, %17, %cst_24 {dimension_numbers = #tpu.dot_dimension_numbers<[1], [0], [0], [1], [0, 0, 1, 1], [], []>} : vector<8x15xf32>, vector<15x8xf32>, vector<8x8xf32> -> vector<8x8xf32>
    %c0_25 = arith.constant 0 : index
    %c0_26 = arith.constant 0 : index
    %39 = vector.load %arg3[%c0_25, %c0_26] : memref<8x1xf32, #tpu.memory_space<vmem>>, vector<8x1xf32>
    %40 = vector.broadcast %39 : vector<8x1xf32> to vector<8x8xf32>
    %41 = arith.addf %38, %40 : vector<8x8xf32>
    %c0_27 = arith.constant 0 : index
    %c0_28 = arith.constant 0 : index
    %42 = vector.load %arg8[%c0_27, %c0_28] : memref<8x1xf32, #tpu.memory_space<vmem>>, vector<8x1xf32>
    %43 = vector.broadcast %42 : vector<8x1xf32> to vector<8x8xf32>
    %44 = arith.mulf %41, %43 : vector<8x8xf32>
    %c0_29 = arith.constant 0 : index
    %c0_30 = arith.constant 0 : index
    %45 = vector.load %arg9[%c0_29, %c0_30] : memref<8x1xf32, #tpu.memory_space<vmem>>, vector<8x1xf32>
    %46 = vector.broadcast %45 : vector<8x1xf32> to vector<8x8xf32>
    %47 = arith.addf %44, %46 : vector<8x8xf32>
    %cst_31 = arith.constant 0.000000e+00 : f32
    %48 = vector.broadcast %cst_31 : f32 to vector<8x8xf32>
    %49 = arith.maximumf %47, %48 : vector<8x8xf32>
    %cst_32 = arith.constant 0.000000e+00 : f32
    %50 = vector.broadcast %cst_32 : f32 to vector<8x10xf32>
    %c0_33 = arith.constant 0 : index
    %c0_34 = arith.constant 0 : index
    %51 = vector.load %arg12[%c0_33, %c0_34] : memref<8x10xf32, #tpu.memory_space<vmem>>, vector<8x10xf32>
    tpu.vector_store %arg12[%c0_33, %c0_34], %50 {strides = array<i32>} : memref<8x10xf32, #tpu.memory_space<vmem>>, vector<8x10xf32>,
    %c0_35 = arith.constant 0 : index
    %c1_36 = arith.constant 1 : index
    %52 = vector.load %arg12[%c0_35, %c1_36] : memref<8x10xf32, #tpu.memory_space<vmem>>, vector<8x8xf32>
    tpu.vector_store %arg12[%c0_35, %c1_36], %49 {strides = array<i32>} : memref<8x10xf32, #tpu.memory_space<vmem>>, vector<8x8xf32>,
    %c0_37 = arith.constant 0 : index
    %c0_38 = arith.constant 0 : index
    %c0_39 = arith.constant 0 : index
    %53 = vector.load %arg4[%c0_37, %c0_38, %c0_39] : memref<3x8x8xf32, #tpu.memory_space<vmem>>, vector<3x8x8xf32>
    %cst_40 = arith.constant 0.000000e+00 : f32
    %54 = vector.broadcast %cst_40 : f32 to vector<8x8xf32>
    %55 = vector.extract_strided_slice %53 {offsets = [0, 0, 0], sizes = [1, 8, 8], strides = [1, 1, 1]} : vector<3x8x8xf32> to vector<1x8x8xf32>
    %56 = vector.shape_cast %55 : vector<1x8x8xf32> to vector<8x8xf32>
    %c0_41 = arith.constant 0 : index
    %c0_42 = arith.constant 0 : index
    %57 = vector.load %arg12[%c0_41, %c0_42] : memref<8x10xf32, #tpu.memory_space<vmem>>, vector<8x8xf32>
    %cst_43 = arith.constant dense<0.000000e+00> : vector<8x8xf32>
    %58 = tpu.matmul %56, %57, %cst_43 {dimension_numbers = #tpu.dot_dimension_numbers<[1], [0], [0], [1], [0, 0, 1, 1], [], []>} : vector<8x8xf32>, vector<8x8xf32>, vector<8x8xf32> -> vector<8x8xf32>
    %59 = arith.addf %54, %58 : vector<8x8xf32>
    %60 = vector.extract_strided_slice %53 {offsets = [1, 0, 0], sizes = [1, 8, 8], strides = [1, 1, 1]} : vector<3x8x8xf32> to vector<1x8x8xf32>
    %61 = vector.shape_cast %60 : vector<1x8x8xf32> to vector<8x8xf32>
    %c0_44 = arith.constant 0 : index
    %c1_45 = arith.constant 1 : index
    %62 = vector.load %arg12[%c0_44, %c1_45] : memref<8x10xf32, #tpu.memory_space<vmem>>, vector<8x8xf32>
    %cst_46 = arith.constant dense<0.000000e+00> : vector<8x8xf32>
    %63 = tpu.matmul %61, %62, %cst_46 {dimension_numbers = #tpu.dot_dimension_numbers<[1], [0], [0], [1], [0, 0, 1, 1], [], []>} : vector<8x8xf32>, vector<8x8xf32>, vector<8x8xf32> -> vector<8x8xf32>
    %64 = arith.addf %59, %63 : vector<8x8xf32>
    %65 = vector.extract_strided_slice %53 {offsets = [2, 0, 0], sizes = [1, 8, 8], strides = [1, 1, 1]} : vector<3x8x8xf32> to vector<1x8x8xf32>
    %66 = vector.shape_cast %65 : vector<1x8x8xf32> to vector<8x8xf32>
    %c0_47 = arith.constant 0 : index
    %c2_48 = arith.constant 2 : index
    %67 = vector.load %arg12[%c0_47, %c2_48] : memref<8x10xf32, #tpu.memory_space<vmem>>, vector<8x8xf32>
    %cst_49 = arith.constant dense<0.000000e+00> : vector<8x8xf32>
    %68 = tpu.matmul %66, %67, %cst_49 {dimension_numbers = #tpu.dot_dimension_numbers<[1], [0], [0], [1], [0, 0, 1, 1], [], []>} : vector<8x8xf32>, vector<8x8xf32>, vector<8x8xf32> -> vector<8x8xf32>
    %69 = arith.addf %64, %68 : vector<8x8xf32>
    %c0_50 = arith.constant 0 : index
    %c0_51 = arith.constant 0 : index
    %70 = vector.load %arg5[%c0_50, %c0_51] : memref<8x1xf32, #tpu.memory_space<vmem>>, vector<8x1xf32>
    %71 = vector.broadcast %70 : vector<8x1xf32> to vector<8x8xf32>
    %72 = arith.addf %69, %71 : vector<8x8xf32>
    %cst_52 = arith.constant 0.000000e+00 : f32
    %73 = vector.broadcast %cst_52 : f32 to vector<4x17xf32>
    %c0_53 = arith.constant 0 : index
    %c0_54 = arith.constant 0 : index
    %74 = vector.load %arg13[%c0_53, %c0_54] : memref<4x17xf32, #tpu.memory_space<vmem>>, vector<4x17xf32>
    tpu.vector_store %arg13[%c0_53, %c0_54], %73 {strides = array<i32>} : memref<4x17xf32, #tpu.memory_space<vmem>>, vector<4x17xf32>,
    %c0_55 = arith.constant 0 : index
    %c0_56 = arith.constant 0 : index
    %75 = vector.load %arg13[%c0_55, %c0_56] : memref<4x17xf32, #tpu.memory_space<vmem>>, vector<4x16xf32>
    tpu.vector_store %arg13[%c0_55, %c0_56], %1 {strides = array<i32>} : memref<4x17xf32, #tpu.memory_space<vmem>>, vector<4x16xf32>,
    %c0_57 = arith.constant 0 : index
    %c0_58 = arith.constant 0 : index
    %76 = vector.load %arg13[%c0_57, %c0_58] : memref<4x17xf32, #tpu.memory_space<vmem>>, vector<4x15xf32>
    %cst_59 = arith.constant dense<0.000000e+00> : vector<4x8xf32>
    %77 = tpu.matmul %76, %17, %cst_59 {dimension_numbers = #tpu.dot_dimension_numbers<[1], [0], [0], [1], [0, 0, 1, 1], [], []>} : vector<4x15xf32>, vector<15x8xf32>, vector<4x8xf32> -> vector<4x8xf32>
    %c0_60 = arith.constant 0 : index
    %c1_61 = arith.constant 1 : index
    %78 = vector.load %arg13[%c0_60, %c1_61] : memref<4x17xf32, #tpu.memory_space<vmem>>, vector<4x15xf32>
    %cst_62 = arith.constant dense<0.000000e+00> : vector<4x8xf32>
    %79 = tpu.matmul %78, %17, %cst_62 {dimension_numbers = #tpu.dot_dimension_numbers<[1], [0], [0], [1], [0, 0, 1, 1], [], []>} : vector<4x15xf32>, vector<15x8xf32>, vector<4x8xf32> -> vector<4x8xf32>
    %80 = arith.maximumf %77, %79 : vector<4x8xf32>
    %cst_63 = arith.constant 0.000000e+00 : f32
    %81 = vector.broadcast %cst_63 : f32 to vector<2x8xf32>
    %cst_64 = arith.constant 0.000000e+00 : f32
    %82 = vector.broadcast %cst_64 : f32 to vector<2x8xf32>
    %83 = tpu.concatenate %81, %80, %82 in 0 : vector<2x8xf32>, vector<4x8xf32>, vector<2x8xf32> -> vector<8x8xf32>
    %84 = arith.addf %72, %83 : vector<8x8xf32>
    %c0_65 = arith.constant 0 : index
    %c0_66 = arith.constant 0 : index
    %c0_67 = arith.constant 0 : index
    %85 = vector.load %arg10[%c0_65, %c0_66, %c0_67] : memref<1x8x8xf32, #tpu.memory_space<vmem>>, vector<1x8x8xf32>
    %86 = vector.shape_cast %85 : vector<1x8x8xf32> to vector<8x8xf32>
    %87 = vector.shape_cast %84 : vector<8x8xf32> to vector<1x8x8xf32>
    tpu.vector_store %arg10[%c0_65, %c0_66, %c0_67], %87 {strides = array<i32>} : memref<1x8x8xf32, #tpu.memory_space<vmem>>, vector<1x8x8xf32>,
    return
  }
  func.func @transform_0(%arg0: i32) -> (i32, i32, i32) {
    %c0_i32 = arith.constant 0 : i32
    %c0_i32_0 = arith.constant 0 : i32
    %c0_i32_1 = arith.constant 0 : i32
    return %arg0, %c0_i32, %c0_i32_0 : i32, i32, i32
  }
  func.func @transform_1(%arg0: i32) -> (i32, i32, i32) {
    %c0_i32 = arith.constant 0 : i32
    %c0_i32_0 = arith.constant 0 : i32
    %c0_i32_1 = arith.constant 0 : i32
    %c0_i32_2 = arith.constant 0 : i32
    return %c0_i32, %c0_i32_0, %c0_i32_1 : i32, i32, i32
  }
  func.func @transform_2(%arg0: i32) -> (i32, i32) {
    %c0_i32 = arith.constant 0 : i32
    %c0_i32_0 = arith.constant 0 : i32
    %c0_i32_1 = arith.constant 0 : i32
    return %c0_i32, %c0_i32_0 : i32, i32
  }
  func.func @transform_3(%arg0: i32) -> (i32, i32, i32) {
    %c0_i32 = arith.constant 0 : i32
    %c0_i32_0 = arith.constant 0 : i32
    %c0_i32_1 = arith.constant 0 : i32
    %c0_i32_2 = arith.constant 0 : i32
    return %c0_i32, %c0_i32_0, %c0_i32_1 : i32, i32, i32
  }
  func.func @transform_4(%arg0: i32) -> (i32, i32) {
    %c0_i32 = arith.constant 0 : i32
    %c0_i32_0 = arith.constant 0 : i32
    %c0_i32_1 = arith.constant 0 : i32
    return %c0_i32, %c0_i32_0 : i32, i32
  }
  func.func @transform_5(%arg0: i32) -> (i32, i32) {
    %c0_i32 = arith.constant 0 : i32
    %c0_i32_0 = arith.constant 0 : i32
    %c0_i32_1 = arith.constant 0 : i32
    return %c0_i32, %c0_i32_0 : i32, i32
  }
  func.func @transform_6(%arg0: i32) -> (i32, i32) {
    %c0_i32 = arith.constant 0 : i32
    %c0_i32_0 = arith.constant 0 : i32
    %c0_i32_1 = arith.constant 0 : i32
    return %c0_i32, %c0_i32_0 : i32, i32
  }
  func.func @transform_7(%arg0: i32) -> (i32, i32) {
    %c0_i32 = arith.constant 0 : i32
    %c0_i32_0 = arith.constant 0 : i32
    %c0_i32_1 = arith.constant 0 : i32
    return %c0_i32, %c0_i32_0 : i32, i32
  }
  func.func @transform_8(%arg0: i32) -> (i32, i32) {
    %c0_i32 = arith.constant 0 : i32
    %c0_i32_0 = arith.constant 0 : i32
    %c0_i32_1 = arith.constant 0 : i32
    return %c0_i32, %c0_i32_0 : i32, i32
  }
  func.func @transform_9(%arg0: i32) -> (i32, i32, i32) {
    %c0_i32 = arith.constant 0 : i32
    %c0_i32_0 = arith.constant 0 : i32
    %c0_i32_1 = arith.constant 0 : i32
    return %arg0, %c0_i32, %c0_i32_0 : i32, i32, i32
  }
}

</mosaic_0001>

<bundles_post_ra>
// kernel: tpu_custom_call.1
= control target key start
LH: loop header
LB: loop body
LE: loop exit
PB: predicated region body
PF: predicated region fallthrough
CT: control target
= control target key end

     0   :  { %14 = vsyncpa [#allocation6], 0  ;;  %s1074_s0 = inlined_call_operand.vmem [shape: f32[2,4,16], index: 0, kind: input, shape index: {}]   ;;  %s1075_s1 = inlined_call_operand.vmem [shape: f32[3,8,4], index: 1, kind: input, shape index: {}]   ;;  %s1076_s2 = inlined_call_operand.vmem [shape: f32[8,1], index: 2, kind: input, shape index: {}]   ;;  %s1077_s3 = inlined_call_operand.vmem [shape: f32[3,8,8], index: 3, kind: input, shape index: {}]   ;;  %s1078_s4 = inlined_call_operand.vmem [shape: f32[8,1], index: 4, kind: input, shape index: {}]   ;;  %s1079_s5 = inlined_call_operand.vmem [shape: f32[4,1], index: 5, kind: input, shape index: {}]   ;;  %s1080_s6 = inlined_call_operand.vmem [shape: f32[4,1], index: 6, kind: input, shape index: {}]   ;;  %s1081_s7 = inlined_call_operand.vmem [shape: f32[8,1], index: 7, kind: input, shape index: {}]   ;;  %s1082_s8 = inlined_call_operand.vmem [shape: f32[8,1], index: 8, kind: input, shape index: {}]   ;;  %s1083_s9 = inlined_call_operand.hbm [shape: f32[2,8,8], index: 9, kind: output, shape index: {}]  }
   0x1   :  { %16 = vsyncpa [#allocation6 + $0x1], 0  ;;  %s921_s30 = smov 0   ;;  %s923_s10 = smov 0  }
   0x2   :  { %s925_s11 = smov 0   ;;  %s927_s12 = smov 0  }
   0x3 LB: > { %s942_s13 = sadd.s32 4294967295, %s863_s12   ;;  %s726_s14 = sadd.s32 4294967294, %s863_s12   ;;  %s863_s12 = sphi %s927_s12, %s1091_s12   ;;  %s859_s11 = sphi %s925_s11, %s1090_s11   ;;  %s855_s10 = sphi %s923_s10, %s1089_s10   ;;  %s851_s30 = sphi %s921_s30, %s1088_s30  }
   0x4   : > { %s946_s15 = sadd.s32 1, %s863_s12   ;;  %s223_s16 = sadd.s32 1, %s859_s11 }
   0x5   : > { %s220_s17 = ssub.s32 %s863_s12, %s946_s15  ;;  %p233_p0 = scmp.ne.s32.totalorder %s859_s11, %s855_s10 }
   0x6   : > { %p221_p1 = scmp.eq.s32.totalorder %s220_s17, 0  ;;  %p234_p2 = scmp.eq.s32.totalorder %s942_s13, 1 }
   0x7   : > { %p239_p3 = scmp.ne.s32.totalorder %s855_s10, %s851_s30  ;;  %p240_p4 = scmp.eq.s32.totalorder %s726_s14, 1 }
   0x8   : > { %s957_s18 = scalar_select %p221_p1, %s859_s11, %s223_s16  }
   0x9   : > { %p959_p5 = por %p234_p2, %p233_p0  ;;  %p963_p6 = por %p240_p4, %p239_p3 }
   0xa   : > { %p729_p7 = scmp.ge.s32.totalorder %s863_s12, 1  ;;  %p289_p8 = scmp.lt.s32.totalorder %s863_s12, 3 }
   0xc   : > { %p290_p9 = pnand %p729_p7, %p289_p8 }
   0xd   : > { %p324_p10 = scmp.lt.s32.totalorder (!%p290_p9), %s942_s13, 1  ;;  %s867_s17 = smov (!%p290_p9), 126  }
   0xe   : > { %293 = sbr.rel (%p290_p9) target bundleno = 930 (0x3a2), region = 56  ;;  %s868_s21 = smov (!%p290_p9), 127  }
   0xf   : > { %s870_s22 = smov (!%p290_p9), 1   ;;  %s321_s29 = sand.u32 (!%p290_p9), 1, %s855_s10  }
  0x10   : > { %s730_s14 = sshll.u32 (!%p290_p9), %s321_s29, 3 }
  0x11   : > { %s323_s25 = scalar_lea.vmem (!%p290_p9), [#allocation5], %s730_s14  ;;  %s821_s14 = scalar_lea.hbm (!%p290_p9), %s1083_s9, 16 }
  0x12   : > { %s664_s26 = sshll.u32 (!%p290_p9), %s323_s25, 4  ;;  %s665_s26 = int_to_ptr.vmem [resolvable:$true] %s664_s26 }
  0x13   : > { %v329_v0 = vld [vmem:[%s1079_s5] sm:$0xf]  ;;  %v865_v1 = vmov 0   ;;  %vm354_vm0 = vcmask 134144   ;;  %v866_v2 = vmov 0.0   ;;  %s325_s27 = scalar_select %p324_p10, %s942_s13, 1  ;;  %v344_v17 = vlaneseq }
  0x14   : > { %799 = vset.pattern.permute.xlu0 %v865_v1  ;;  %800 = vset.pattern.permute.xlu2 %v865_v1  ;;  %591 = vst.msk [vmem:[#allocation4] sm:$0xf] %vm354_vm0, %v866_v2  ;;  %v336_v3 = vld [vmem:[%s1080_s6] sm:$0xf]  ;;  %vm356_vm1 = vcmask 125952   ;;  %vm369_vm2 = vcmask 1043456  }
  0x15   : > { %332 = vperm.xlu0 %799, %v329_v0   ;;  %355 = vst.msk [vmem:[#allocation2] sm:$0xf] %vm354_vm0, %v866_v2  ;;  %v486_v4 = vld [vmem:[%s1082_s8] sm:$0xff]  ;;  %s731_s28 = sshll.u32 %s325_s27, 2  ;;  %vm365_vm3 = vcmask 31744   ;;  %v360_v13 = vld [vmem:[%s1075_s1 + $0x10] sm:$0xff] }
  0x16   : > { %s327_s16 = scalar_lea.vmem %s1074_s0, %s731_s28  ;;  %v358_v12 = vld [vmem:[%s1075_s1] sm:$0xff]  ;;  %v359_v15 = vld [vmem:[%s1075_s1 + $0x8] sm:$0xff]  ;;  %v345_v18 = vshrl.u32 %v344_v17, 7  ;;  %v348_v19 = vand.u32 127, %v344_v17  ;;  %vm455_vm5 = vcmask 1046528   ;;  %v869_v24 = vmov 1.0  }
  0x17   : > { %v328_v5 = vld [vmem:[%s327_s16] sm:$0xf]  ;;  %vm451_vm7 = vcmask 121856   ;;  %vm494_vm8 = vcmask 80896   ;;  %vm500_vm9 = vcmask 72712   ;;  %vm510_vm10 = vcmask 64512  }
  0x18   : > { %592 = vst.msk [vmem:[#allocation4] sm:$0xf] %vm356_vm1, %v328_v5  ;;  %v346_v20 = vadd.s32 8, %v345_v18  ;;  %v349_v21 = vmul.u32 2, %v348_v19  ;;  %v445_v25 = vld [vmem:[%s1076_s2] sm:$0xff]  ;;  %v503_v45 = vld [vmem:[%s1077_s3 + $0x8] sm:$0xff] }
  0x19   : > { %448 = vperm.xlu2 %800, %v445_v25   ;;  %v479_v26 = vld [vmem:[%s1081_s7] sm:$0xff]  ;;  %495 = vst.msk [vmem:[#allocation3] sm:$0xff] %vm494_vm8, %v866_v2  ;;  %v504_v48 = vld [vmem:[%s1077_s3 + $0x10] sm:$0xff]  ;;  %vm645_vm11 = vcmask 1041408   ;;  %s751_s16 = sshll.u32 %s942_s13, 3  ;;  %vm647_vm12 = vcmask 1045504  }
  0x1a   : > { %vm351_vm4 = vcmp.eq.s32.totalorder %v346_v20, %v349_v21  ;;  %vm1001_vm6 = vcmp.eq.s32.totalorder %v345_v18, %v349_v21  ;;  %v584_v43 = vld [vmem:[%s1078_s4] sm:$0xff]  ;;  %s662_s24 = scalar_lea.hbm %s1083_s9, %s751_s16  ;;  %s652_s13 = scalar_lea.sflag [#allocation6], %s321_s29 }
  0x1b   : > { %v353_v22 = vsel %vm351_vm4, 1.0, %v866_v2  ;;  %v502_v44 = vld [vmem:[%s1077_s3] sm:$0xff]  ;;  %s666_s27 = sshll.u32 %s662_s24, 4  ;;  %s667_s27 = int_to_ptr.hbm [resolvable:$true] %s666_s27 }
  0x1c   : > { %738 = vmatpush.msk.msra.mxu3 %vm455_vm5, %v353_v22  ;;  %s815_s28 = sshra.s32 %s667_s27, 4  ;;  %s816_s28 = int_to_ptr.hbm [resolvable:$true] %s815_s28 }
  0x1d   : > { %339 = vperm.xlu0 %799, %v336_v3   ;;  %p822_p0 = scmp.lt.s32.totalorder %s816_s28, %s1083_s9 }
  0x1e   : > { %739 = vmatpush.msk.msra.mxu3 %vm1001_vm6, %v869_v24 }
  0x1f   : > { %v593_v40 = vld [vmem:[#allocation4] sm:$0xf] }
  0x20   : > { %744 = vmatpush.msk.msrb.mxu3 %vm455_vm5, %v353_v22 }
  0x21   : > { %482 = vperm.xlu2 %800, %v479_v26  }
  0x22   : > { %745 = vmatpush.msk.msrb.mxu3 %vm1001_vm6, %v869_v24 }
  0x25   : > { %489 = vperm.xlu0 %799, %v486_v4  }
  0x73   : > { %v449_v32 = vpop.permute.xlu2 %448 }
  0x7b   : > { %v483_v35 = vpop.permute.xlu2 %482 }
  0x87   : > { %v333_v6 = vpop.permute.xlu0 %332 }
  0x88   : > { %v335_v7 = vmul.f32 %v333_v6, %v328_v5 }
  0x8f   : > { %v340_v8 = vpop.permute.xlu0 %339 }
  0x90   : > { %v342_v9 = vadd.f32 %v340_v8, %v335_v7 }
  0x92   : > { %v343_v10 = vmax.f32 %v342_v9, 0.0 }
  0x94   : > { %357 = vst.msk [vmem:[#allocation2] sm:$0xf] %vm356_vm1, %v343_v10 }
  0x97   : > { %v490_v37 = vpop.permute.xlu0 %489 }
  0x9b   : > { %v361_v11 = vld [vmem:[#allocation2] sm:$0xf] }
  0x9c   : > { %417 = vrot.lane.b32.xlu1 %v361_v11, %s867_s17  ;;  %734 = vmatpush.msk.msra.mxu1 %vm369_vm2, %v361_v11 }
  0x9d   : > { %735 = vmatmul.msk.f32.vlgmr.msra.gmra.mxu1 %vm365_vm3, %v358_v12 }
  0xa4   : > { %363 = vrot.lane.b32.xlu1 %v361_v11, %s868_s21 }
 0x10e   : > { %v418_v14 = vpop.permute.xlu1 %417 }
 0x10f   : > { %736 = vmatpush.msk.msra.mxu2 %vm369_vm2, %v418_v14 }
 0x110   : > { %737 = vmatmul.msk.f32.vlgmr.msra.gmra.mxu2 %vm365_vm3, %v360_v13 }
 0x116   : > { %v364_v16 = vpop.permute.xlu1 %363 }
 0x117   : > { %732 = vmatpush.msk.msra.mxu0 %vm369_vm2, %v364_v16 }
 0x118   : > { %733 = vmatmul.msk.f32.vlgmr.msra.gmra.mxu0 %vm365_vm3, %v359_v15 }
 0x11a   : > { %v414_v27 = vpop.f32.mrf.mxu1 }
 0x193   : > { %v441_v29 = vpop.f32.mrf.mxu2 }
 0x195   : > { %v389_v28 = vpop.f32.mrf.mxu0 }
 0x196   : > { %v415_v30 = vadd.f32 %v414_v27, %v389_v28 }
 0x198   : > { %v444_v31 = vadd.f32 %v441_v29, %v415_v30 }
 0x19a   : > { %740 = vmatmul.msk.f32.vlgmr.msra.gmra.mxu3 %vm451_vm7, %v444_v31 }
 0x1a2   : > { %746 = vmatmul.msk.f32.vlgmr.msrb.gmra.mxu3 %vm451_vm7, %v593_v40 }
 0x21d   : > { %v476_v33 = vpop.f32.mrf.mxu3 }
 0x21e   : > { %v477_v34 = vadd.f32 %v476_v33, %v449_v32 }
 0x220   : > { %v485_v36 = vmul.f32 %v483_v35, %v477_v34 }
 0x222   : > { %v492_v38 = vadd.f32 %v490_v37, %v485_v36 }
 0x224   : > { %v493_v39 = vmax.f32 %v492_v38, 0.0 }
 0x225   : > { %v614_v51 = vpop.f32.mrf.mxu3 }
 0x226   : > { %497 = vrot.lane.b32.xlu1 %v493_v39, %s870_s22 }
 0x22e   : > { %617 = vrot.lane.b32.xlu1 %v593_v40, %s868_s21 }
 0x298   : > { %v498_v41 = vpop.permute.xlu1 %497 }
 0x299   : > { %501 = vst.msk [vmem:[#allocation3] sm:$0xff] %vm500_vm9, %v498_v41 }
 0x2a0   : > { %v505_v42 = vld [vmem:[#allocation3] sm:$0xff]  ;;  %v618_v47 = vpop.permute.xlu1 %617 }
 0x2a1   : > { %557 = vrot.lane.b32.xlu0 %v505_v42, %s867_s17  ;;  %507 = vrot.lane.b32.xlu2 %v505_v42, %s868_s21  ;;  %s817_s17 = scalar_lea.hbm %s816_s28, 8 }
 0x2a2   : > { %552 = vmatpush.msrb.mxu1 %v505_v42  ;;  %p818_p11 = scmp.ne.s32.totalorder %s816_s28, %s817_s17  ;;  %p823_p1 = scmp.lt.s32.totalorder %s821_s14, %s817_s17 }
 0x2a3   : > { %742 = vmatmul.msk.f32.vlgmr.msrb.gmra.mxu1 %vm510_vm10, %v502_v44 }
 0x2a4   : > { %p819_p12 = pnand %p818_p11, %p959_p5  ;;  %p824_p2 = por %p823_p1, %p822_p0 }
 0x2a6   : > { %p820_p13 = pneg %p819_p12 }
 0x2a8   : > { %p825_p3 = pnand %p824_p2, %p820_p13 }
 0x2a9   : > { %587 = vperm.xlu2 %800, %v584_v43  }
 0x2fb   : > { %v508_v46 = vpop.permute.xlu2 %507 }
 0x2fc   : > { %529 = vmatpush.msrb.mxu0 %v508_v46 }
 0x2fd   : > { %741 = vmatmul.msk.f32.vlgmr.msrb.gmra.mxu0 %vm510_vm10, %v503_v45 }
 0x2fe   : > { %747 = vmatpush.msk.msra.mxu0 %vm455_vm5, %v353_v22 }
 0x300   : > { %748 = vmatpush.msk.msra.mxu0 %vm1001_vm6, %v869_v24 }
 0x303   : > { %v588_v60 = vpop.permute.xlu2 %587 }
 0x305   : > { %749 = vmatmul.msk.f32.vlgmr.msra.gmra.mxu0 %vm451_vm7, %v618_v47 }
 0x313   : > { %v558_v49 = vpop.permute.xlu0 %557 }
 0x314   : > { %578 = vmatpush.msrb.mxu2 %v558_v49 }
 0x315   : > { %743 = vmatmul.msk.f32.vlgmr.msrb.gmra.mxu2 %vm510_vm10, %v504_v48 }
 0x320   : > { %v554_v55 = vpop.f32.mrf.mxu1 }
 0x37a   : > { %v531_v50 = vpop.f32.mrf.mxu0 }
 0x37b   : > { %v555_v56 = vadd.f32 %v554_v55, %v531_v50 }
 0x382   : > { %v638_v52 = vpop.f32.mrf.mxu0 }
 0x383   : > { %v641_v53 = vmax.f32 %v614_v51, %v638_v52 }
 0x385   : > { %v643_v54 = vrot.slane %v641_v53, 6 }
 0x387   : > { %v646_v57 = vsel %vm645_vm11, 0.0, %v643_v54 }
 0x388   : > { %v648_v61 = vsel %vm647_vm12, %v646_v57, 0.0 }
 0x398   : > { %v580_v58 = vpop.f32.mrf.mxu2 }
 0x399   : > { %v583_v59 = vadd.f32 %v580_v58, %v555_v56 }
 0x39b   : > { %v590_v62 = vadd.f32 %v588_v60, %v583_v59 }
 0x39d   : > { %v649_v63 = vadd.f32 %v648_v61, %v590_v62 }
 0x39f   : > { %650 = vst.msk [vmem:[%s323_s25] sm:$0xff] %vm510_vm10, %v649_v63 }
 0x3a0   : > { %828 = shalt.err (!%p825_p3)
}
 0x3a1   : > { %754 = dma.vmem_to_hbm [thread:$0]  (%p959_p5), %s665_s26, 128, %s667_s27, %s652_s13  }
 0x3a2 PF: > { %p760_p4 = scmp.ge.s32.totalorder %s863_s12, 2  ;;  %s678_s29 = sand.u32 1, %s851_s30  }
 0x3a3   : > { %s679_s24 = scalar_lea.sflag [#allocation6], %s678_s29 }
 0x3a4   : > { %p757_p7 = pnand %p760_p4, %p963_p6 }
 0x3a6   : > { %p758_p8 = pneg %p757_p7 }
 0x3a8   : > { %846 = dma.done.wait (%p758_p8), %s679_s24, 128  }
 0x3a9   : > { %848 = vsyncadd (%p758_p8), %s679_s24, 4294967168  ;;  %p19_p9 = scmp.ge.s32.totalorder %s946_s15, 4   ;;  %s1088_s30 = smov %s855_s10 }
 0x3aa   : > { %s1089_s10 = smov %s859_s11  ;;  %s1090_s11 = smov %s957_s18 }
 0x3ab   : > { %s1091_s12 = smov %s946_s15  ;;  %21 = sbr.rel (!%p19_p9) target bundleno = 3 (0x3), region = 91 }
 0x3b0   :  { %685 = vsyncpa [#allocation6], 1 }
 0x3b1   :  { %687 = vsyncpa [#allocation6 + $0x1], 1 }

</bundles_post_ra>
